<compile_context>
chip_gen: v6e
topology: v6e:2x2x1
jax: 0.10.0
libtpu: 0.0.40
codegen_flags: <defaults>
</compile_context>

<pallas_src>
import functools

import jax
import jax.numpy as jnp
from jax.experimental import pallas as pl
from jax.experimental.pallas import tpu as pltpu


def mlp_kernel(x_ref, w1_ref, b1_ref, w2_ref, b2_ref, w3_ref, b3_ref, o_ref, *,
               bf16_tanh):
    # x streams in as f32 (single HBM pass); cast to bf16 here, right before
    # the MXU matmul, so accumulation stays f32.
    x = x_ref[...].astype(jnp.bfloat16)                                  # (TM, 47)

    # Layer 1: (TM, 47) @ (47, 50) on the MXU, f32 accumulate, + bias.
    s1 = jnp.dot(x, w1_ref[...], preferred_element_type=jnp.float32) + b1_ref[...]
    if bf16_tanh:
        # v6e/v7x: bf16 EUP tanh; result feeds the next MXU matmul directly
        # (the bf16 cast we needed anyway is folded into the tanh input).
        h1 = jnp.tanh(s1.astype(jnp.bfloat16))                           # (TM, 50) bf16
    else:
        # v5e: no bf16 EUP -> f32 tanh, then cast for the MXU.
        h1 = jnp.tanh(s1).astype(jnp.bfloat16)

    # Layer 2: (TM, 50) @ (50, 35) on the MXU, f32 accumulate, + bias.
    s2 = jnp.dot(h1, w2_ref[...], preferred_element_type=jnp.float32) + b2_ref[...]
    h2 = jnp.tanh(s2.astype(jnp.bfloat16)) if bf16_tanh else jnp.tanh(s2)

    # Layer 3 (N=1): VPU multiply + lane reduction instead of a 1-wide MXU matmul.
    # TODO(synk): a feature-major (feature-in-sublane, batch-in-lane) layout for
    # h1/h2 would make the tanh/VPU vregs fully lane-dense and turn this into a
    # sublane sum with no output relayout; needs a transposed x stream.
    w3_row = w3_ref[...].astype(jnp.float32)                             # (1, 35)
    o = jnp.sum(h2.astype(jnp.float32) * w3_row, axis=-1) + b3_ref[0]    # (TM,)

    # Lane-dense store: (1, TM) row, TM a multiple of 128 -> unmasked vst.
    o_ref[0, :] = o.astype(o_ref.dtype)


def _round_up(n, m):
    return (n + m - 1) // m * m


def _supports_bf16_tanh():
    """Best-effort generation check: bf16 EUP exists on v6e / v7x, not on v5e."""
    try:
        kind = jax.devices()[0].device_kind.lower()
    except Exception:
        return False
    return any(tag in kind for tag in ("v6", "6e", "v7", "7x"))


def prepare_params(params):
    """One-time prep (hoisted out of the per-call path): cast the tiny weights
    to bf16 for the MXU.  Biases stay f32."""
    w1, b1, w2, b2, w3, b3 = params
    return (w1.astype(jnp.bfloat16), b1,
            w2.astype(jnp.bfloat16), b2,
            w3.astype(jnp.bfloat16), b3)


def mlp_regressor_forward(x, prepared_params, *, block_m=4096, bf16_tanh=None):
    """x: (B, 47) float32. Returns (B,) float32 (matches o.view(-1))."""
    w1_bf, b1, w2_bf, b2, w3_bf, b3 = prepared_params
    B, F = x.shape
    H1 = w1_bf.shape[1]
    H2 = w2_bf.shape[1]
    if bf16_tanh is None:
        bf16_tanh = _supports_bf16_tanh()

    # Batch tile: multiple of 128 keeps the x tile sublane-aligned and the
    # (1, TM) output block lane-dense.  Large default (4096) amortizes the
    # ~0.35us per-grid-step overhead; VMEM use stays ~3-4 MiB (bf16 x double
    # buffer + f32 intermediates), far under every generation's budget.
    tm = _round_up(max(block_m, 128), 128)
    # Keep at least 2 grid steps when the batch allows it, so
    # dimension_semantics=("parallel",) actually shards across v7x's two TCs.
    tm = min(tm, max(128, _round_up(pl.cdiv(B, 2), 128)))

    if B < tm:
        # Tiny batch: cheap to pad up to a single full tile.
        x = jnp.pad(x, ((0, tm - B), (0, 0)))
        b_rows = tm
    else:
        # Ragged tail handled by a partial last block: out-of-bounds rows of the
        # final x tile are undefined, but their outputs are discarded by the
        # [:B] slice below (nothing reduces across rows).
        b_rows = B
    grid = (pl.cdiv(b_rows, tm),)

    kernel = functools.partial(mlp_kernel, bf16_tanh=bf16_tanh)

    out = pl.pallas_call(
        kernel,
        out_shape=jax.ShapeDtypeStruct((grid[0], tm), jnp.float32),
        grid=grid,
        in_specs=[
            pl.BlockSpec((tm, F), lambda i: (i, 0)),             # x: f32, one HBM pass, pipelined
            pl.BlockSpec((F, H1), lambda i: (0, 0)),             # w1 (resident)
            pl.BlockSpec((1, H1), lambda i: (0, 0)),             # b1 (resident)
            pl.BlockSpec((H1, H2), lambda i: (0, 0)),            # w2 (resident)
            pl.BlockSpec((1, H2), lambda i: (0, 0)),             # b2 (resident)
            pl.BlockSpec((1, H2), lambda i: (0, 0)),             # w3 row (resident)
            pl.BlockSpec(memory_space=pltpu.MemorySpace.SMEM),   # b3 scalar
        ],
        out_specs=pl.BlockSpec((1, tm), lambda i: (i, 0)),       # lane-dense output row
        compiler_params=pltpu.CompilerParams(
            dimension_semantics=("parallel",),                   # megacore sharding on v7x
            vmem_limit_bytes=48 * 1024 * 1024,                   # > v5e's 16 MiB default, < v7x's 64 MiB physical
        ),
    )(x, w1_bf, b1, w2_bf, b2, w3_bf, b3)

    return out.reshape(-1)[:B]


def init_params(key):
    """Deterministic init mimicking nn.Linear default (uniform +/- 1/sqrt(fan_in))."""
    def linear(key, fan_in, fan_out):
        kw, kb = jax.random.split(key)
        bound = 1.0 / jnp.sqrt(jnp.float32(fan_in))
        w = jax.random.uniform(kw, (fan_in, fan_out), jnp.float32, -bound, bound)
        b = jax.random.uniform(kb, (1, fan_out), jnp.float32, -bound, bound)
        return w, b

    k1, k2, k3 = jax.random.split(key, 3)
    w1, b1 = linear(k1, 47, 50)
    w2, b2 = linear(k2, 50, 35)
    w3_io, b3_io = linear(k3, 35, 1)          # (35, 1), (1, 1)
    w3 = w3_io.reshape(1, 35)                 # row vector for the VPU/XLU final layer
    b3 = b3_io.reshape(1,)                    # scalar bias (lives in SMEM)
    return (w1, b1, w2, b2, w3, b3)


def reference_forward(x, params, *, bf16_tanh):
    """Plain-JAX reference mirroring the kernel's bf16-input / f32-accumulate
    arithmetic (the bf16 casts are a documented deviation from pure-f32 torch)."""
    w1, b1, w2, b2, w3, b3 = params
    bf16, f32 = jnp.bfloat16, jnp.float32
    xb = x.astype(bf16)
    w1b, w2b, w3b = (w.astype(bf16) for w in (w1, w2, w3))
    s1 = jnp.dot(xb, w1b, preferred_element_type=f32) + b1
    h1 = jnp.tanh(s1.astype(bf16)) if bf16_tanh else jnp.tanh(s1).astype(bf16)
    s2 = jnp.dot(h1, w2b, preferred_element_type=f32) + b2
    h2 = jnp.tanh(s2.astype(bf16)) if bf16_tanh else jnp.tanh(s2)
    o = jnp.sum(h2.astype(f32) * w3b.astype(f32), axis=-1) + b3[0]
    return o.reshape(-1)


if __name__ == "__main__":
    key = jax.random.PRNGKey(0)
    kx, kp = jax.random.split(key)
    params = init_params(kp)
    prepared = prepare_params(params)          # one-time weight bf16 cast
    bf16_tanh = _supports_bf16_tanh()

    # Small demo batch (pads up to one 128-row tile).
    B = 8
    x = jax.random.normal(kx, (B, 47), dtype=jnp.float32)
    out = jax.block_until_ready(mlp_regressor_forward(x, prepared, bf16_tanh=bf16_tanh))
    ref = reference_forward(x, params, bf16_tanh=bf16_tanh)
    assert out.shape == (B,)
    assert jnp.allclose(out, ref, atol=2e-2, rtol=2e-2), (out, ref)

    # Default tiling with a ragged tail: 300 rows -> tm=256, grid=2 (partial last tile).
    B2 = 300
    x2 = jax.random.normal(jax.random.PRNGKey(1), (B2, 47), dtype=jnp.float32)
    out2 = jax.block_until_ready(mlp_regressor_forward(x2, prepared, bf16_tanh=bf16_tanh))
    ref2 = reference_forward(x2, params, bf16_tanh=bf16_tanh)
    assert out2.shape == (B2,)
    assert jnp.allclose(out2, ref2, atol=2e-2, rtol=2e-2), (out2, ref2)

    # Explicit small tile: exercises a 3-step grid (tm=128) with a partial tail.
    out3 = jax.block_until_ready(
        mlp_regressor_forward(x2, prepared, block_m=128, bf16_tanh=bf16_tanh))
    assert out3.shape == (B2,)
    assert jnp.allclose(out3, ref2, atol=2e-2, rtol=2e-2), (out3, ref2)

    print("KERNEL_OK")
</pallas_src>

<mosaic_0001>
module attributes {stable_mosaic.version = 11 : i64} {
  func.func @mlp_kernel(%arg0: i32, %arg1: memref<128x47xf32, #tpu.memory_space<vmem>>, %arg2: memref<47x50xbf16, #tpu.memory_space<vmem>>, %arg3: memref<1x50xf32, #tpu.memory_space<vmem>>, %arg4: memref<50x35xbf16, #tpu.memory_space<vmem>>, %arg5: memref<1x35xf32, #tpu.memory_space<vmem>>, %arg6: memref<1x35xbf16, #tpu.memory_space<vmem>>, %arg7: memref<1xf32, #tpu.memory_space<smem>>, %arg8: memref<1x128xf32, #tpu.memory_space<vmem>>) attributes {dimension_semantics = [#tpu.dimension_semantics<parallel>], iteration_bounds = array<i64: 1>, scalar_prefetch = 0 : i64, scratch_operands = 0 : i64, tpu.core_type = #tpu.core_type<tc>, window_params = [{transform_indices = @transform_0, window_bounds = array<i64: 128, 47>}, {pipeline_mode = #tpu.pipeline_mode<synchronous>, transform_indices = @transform_1, window_bounds = array<i64: 47, 50>}, {pipeline_mode = #tpu.pipeline_mode<synchronous>, transform_indices = @transform_2, window_bounds = array<i64: 1, 50>}, {pipeline_mode = #tpu.pipeline_mode<synchronous>, transform_indices = @transform_3, window_bounds = array<i64: 50, 35>}, {pipeline_mode = #tpu.pipeline_mode<synchronous>, transform_indices = @transform_4, window_bounds = array<i64: 1, 35>}, {pipeline_mode = #tpu.pipeline_mode<synchronous>, transform_indices = @transform_5, window_bounds = array<i64: 1, 35>}, {transform_indices = @transform_6, window_bounds = array<i64: 1>}, {transform_indices = @transform_7, window_bounds = array<i64: 1, 128>}]} {
    %c0 = arith.constant 0 : index
    %c0_0 = arith.constant 0 : index
    %0 = vector.load %arg1[%c0, %c0_0] : memref<128x47xf32, #tpu.memory_space<vmem>>, vector<128x47xf32>
    %1 = arith.truncf %0 : vector<128x47xf32> to vector<128x47xbf16>
    %c0_1 = arith.constant 0 : index
    %c0_2 = arith.constant 0 : index
    %2 = vector.load %arg2[%c0_1, %c0_2] : memref<47x50xbf16, #tpu.memory_space<vmem>>, vector<47x50xbf16>
    %cst = arith.constant dense<0.000000e+00> : vector<128x50xf32>
    %3 = tpu.matmul %1, %2, %cst {dimension_numbers = #tpu.dot_dimension_numbers<[1], [0], [0], [1], [0, 0, 1, 1], [], []>} : vector<128x47xbf16>, vector<47x50xbf16>, vector<128x50xf32> -> vector<128x50xf32>
    %c0_3 = arith.constant 0 : index
    %c0_4 = arith.constant 0 : index
    %4 = vector.load %arg3[%c0_3, %c0_4] : memref<1x50xf32, #tpu.memory_space<vmem>>, vector<1x50xf32>
    %5 = vector.broadcast %4 : vector<1x50xf32> to vector<128x50xf32>
    %6 = arith.addf %3, %5 : vector<128x50xf32>
    %7 = math.tanh %6 : vector<128x50xf32>
    %8 = arith.truncf %7 : vector<128x50xf32> to vector<128x50xbf16>
    %c0_5 = arith.constant 0 : index
    %c0_6 = arith.constant 0 : index
    %9 = vector.load %arg4[%c0_5, %c0_6] : memref<50x35xbf16, #tpu.memory_space<vmem>>, vector<50x35xbf16>
    %cst_7 = arith.constant dense<0.000000e+00> : vector<128x35xf32>
    %10 = tpu.matmul %8, %9, %cst_7 {dimension_numbers = #tpu.dot_dimension_numbers<[1], [0], [0], [1], [0, 0, 1, 1], [], []>} : vector<128x50xbf16>, vector<50x35xbf16>, vector<128x35xf32> -> vector<128x35xf32>
    %c0_8 = arith.constant 0 : index
    %c0_9 = arith.constant 0 : index
    %11 = vector.load %arg5[%c0_8, %c0_9] : memref<1x35xf32, #tpu.memory_space<vmem>>, vector<1x35xf32>
    %12 = vector.broadcast %11 : vector<1x35xf32> to vector<128x35xf32>
    %13 = arith.addf %10, %12 : vector<128x35xf32>
    %14 = math.tanh %13 : vector<128x35xf32>
    %c0_10 = arith.constant 0 : index
    %c0_11 = arith.constant 0 : index
    %15 = vector.load %arg6[%c0_10, %c0_11] : memref<1x35xbf16, #tpu.memory_space<vmem>>, vector<1x35xbf16>
    %16 = arith.extf %15 : vector<1x35xbf16> to vector<1x35xf32>
    %17 = vector.broadcast %16 : vector<1x35xf32> to vector<128x35xf32>
    %18 = arith.mulf %14, %17 : vector<128x35xf32>
    %cst_12 = arith.constant dense<0.000000e+00> : vector<128xf32>
    %19 = vector.multi_reduction <add>, %18, %cst_12 [1] : vector<128x35xf32> to vector<128xf32>
    %c0_13 = arith.constant 0 : index
    %20 = memref.load %arg7[%c0_13] : memref<1xf32, #tpu.memory_space<smem>>
    %21 = vector.broadcast %20 : f32 to vector<128xf32>
    %22 = arith.addf %19, %21 : vector<128xf32>
    %c0_14 = arith.constant 0 : index
    %c0_15 = arith.constant 0 : index
    %23 = vector.load %arg8[%c0_14, %c0_15] : memref<1x128xf32, #tpu.memory_space<vmem>>, vector<1x128xf32>
    %24 = vector.shape_cast %23 : vector<1x128xf32> to vector<128xf32>
    %25 = vector.shape_cast %22 : vector<128xf32> to vector<1x128xf32>
    tpu.vector_store %arg8[%c0_14, %c0_15], %25 {strides = array<i32>} : memref<1x128xf32, #tpu.memory_space<vmem>>, vector<1x128xf32>,
    return
  }
  func.func @transform_0(%arg0: i32) -> (i32, i32) {
    %c0_i32 = arith.constant 0 : i32
    %c0_i32_0 = arith.constant 0 : i32
    return %arg0, %c0_i32 : i32, i32
  }
  func.func @transform_1(%arg0: i32) -> (i32, i32) {
    %c0_i32 = arith.constant 0 : i32
    %c0_i32_0 = arith.constant 0 : i32
    %c0_i32_1 = arith.constant 0 : i32
    return %c0_i32, %c0_i32_0 : i32, i32
  }
  func.func @transform_2(%arg0: i32) -> (i32, i32) {
    %c0_i32 = arith.constant 0 : i32
    %c0_i32_0 = arith.constant 0 : i32
    %c0_i32_1 = arith.constant 0 : i32
    return %c0_i32, %c0_i32_0 : i32, i32
  }
  func.func @transform_3(%arg0: i32) -> (i32, i32) {
    %c0_i32 = arith.constant 0 : i32
    %c0_i32_0 = arith.constant 0 : i32
    %c0_i32_1 = arith.constant 0 : i32
    return %c0_i32, %c0_i32_0 : i32, i32
  }
  func.func @transform_4(%arg0: i32) -> (i32, i32) {
    %c0_i32 = arith.constant 0 : i32
    %c0_i32_0 = arith.constant 0 : i32
    %c0_i32_1 = arith.constant 0 : i32
    return %c0_i32, %c0_i32_0 : i32, i32
  }
  func.func @transform_5(%arg0: i32) -> (i32, i32) {
    %c0_i32 = arith.constant 0 : i32
    %c0_i32_0 = arith.constant 0 : i32
    %c0_i32_1 = arith.constant 0 : i32
    return %c0_i32, %c0_i32_0 : i32, i32
  }
  func.func @transform_6(%arg0: i32) -> i32 {
    %c0_i32 = arith.constant 0 : i32
    %c0_i32_0 = arith.constant 0 : i32
    return %c0_i32 : i32
  }
  func.func @transform_7(%arg0: i32) -> (i32, i32) {
    %c0_i32 = arith.constant 0 : i32
    %c0_i32_0 = arith.constant 0 : i32
    return %arg0, %c0_i32 : i32, i32
  }
}

</mosaic_0001>

<bundles_post_ra>
// kernel: tpu_custom_call.1
= control target key start
LH: loop header
LB: loop body
LE: loop exit
PB: predicated region body
PF: predicated region fallthrough
CT: control target
= control target key end

     0   :  { %vm108_vm0 = vcmask 1046528   ;;  %vm109_vm1 = vcmask 1047552   ;;  %v835_v1 = vmov 65535   ;;  %vm83_vm2 = vcmask 384000   ;;  %s1086_s0 = inlined_call_operand.vmem [shape: f32[128,47], index: 0, kind: input, shape index: {}]   ;;  %s1087_s1 = inlined_call_operand.vmem [shape: bf16[47,50], index: 1, kind: input, shape index: {}]   ;;  %s1088_s2 = inlined_call_operand.vmem [shape: f32[1,50], index: 2, kind: input, shape index: {}]   ;;  %s1089_s3 = inlined_call_operand.vmem [shape: bf16[50,35], index: 3, kind: input, shape index: {}]   ;;  %s1090_s4 = inlined_call_operand.vmem [shape: f32[1,35], index: 4, kind: input, shape index: {}]   ;;  %s1091_s5 = inlined_call_operand.vmem [shape: bf16[1,35], index: 5, kind: input, shape index: {}]   ;;  %s1092_s6 = inlined_call_operand.<no memory space> [shape: f32[1], index: 6, kind: input, shape index: {}]   ;;  %s1093_s7 = inlined_call_operand.hbm [shape: f32[1,128], index: 7, kind: output, shape index: {}]  }
   0x1   :  { %v742_v0 = vld [vmem:[%s1087_s1 + $0x10] sm:$0xff]   ;;  %v110_v2 = vsel %vm108_vm0, 4294967295, %v835_v1  ;;  %v29_v4 = vld [vmem:[%s1086_s0] sm:$0xff]  ;;  %v30_v5 = vld [vmem:[%s1086_s0 + $0x8] sm:$0xff] }
   0x2   :  { %v111_v3 = vsel %vm109_vm1, %v110_v2, 0  ;;  %v743_v7 = vld [vmem:[%s1087_s1 + $0x8] sm:$0xff]   ;;  %v45_v8 = vpack.c.bf16 %v30_v5, %v29_v4  ;;  %v744_v9 = vld [vmem:[%s1087_s1] sm:$0xff]   ;;  %v31_v10 = vld [vmem:[%s1086_s0 + $0x10] sm:$0xff] }
   0x3   :  { %v113_v6 = vand.u32 %v742_v0, %v111_v3  ;;  %v32_v11 = vld [vmem:[%s1086_s0 + $0x18] sm:$0xff] }
   0x4   :  { %699 = vmatprep.mubr.msk.bf16.mxu0 %vm83_vm2, %v45_v8 }
   0x5   :  { %693 = vmatprep.subr.bf16.mxu0 %v113_v6 }
   0x6   :  { %694 = vmatpush3.bf16.msra.mxu0 %v113_v6 }
   0x7   :  { %695 = vmatprep.subr.bf16.mxu0 %v743_v7 }
   0xa   :  { %696 = vmatpush3.bf16.msra.mxu0 %v743_v7 }
   0xb   :  { %13 = vsyncpa [#allocation4], 0  ;;  %697 = vmatprep.subr.bf16.mxu0 %v744_v9  ;;  %v33_v12 = vld [vmem:[%s1086_s0 + $0x20] sm:$0xff]  ;;  %v34_v13 = vld [vmem:[%s1086_s0 + $0x28] sm:$0xff]  ;;  %v46_v14 = vpack.c.bf16 %v32_v11, %v31_v10  ;;  %vm296_vm3 = vcmask 1040384   ;;  %vm271_vm4 = vcmask 408576  }
   0xc   :  { %v47_v15 = vpack.c.bf16 %v34_v13, %v33_v12  ;;  %v35_v16 = vld [vmem:[%s1086_s0 + $0x30] sm:$0xff]  ;;  %v36_v17 = vld [vmem:[%s1086_s0 + $0x38] sm:$0xff]  ;;  %v37_v18 = vld [vmem:[%s1086_s0 + $0x40] sm:$0xff]  ;;  %vm435_vm5 = vcmask 285696   ;;  %vm529_vm6 = vcmask 130112   ;;  %vm536_vm7 = vcmask 195712  }
   0xd   :  { %v38_v19 = vld [vmem:[%s1086_s0 + $0x48] sm:$0xff]  ;;  %v48_v20 = vpack.c.bf16 %v36_v17, %v35_v16  ;;  %v39_v22 = vld [vmem:[%s1086_s0 + $0x50] sm:$0xff]  ;;  %v40_v23 = vld [vmem:[%s1086_s0 + $0x58] sm:$0xff]  ;;  %vm543_vm8 = vcmask 261312   ;;  %vm550_vm9 = vcmask 326912   ;;  %vm557_vm10 = vcmask 392512  }
   0xe   :  { %698 = vmatpush3.bf16.msra.mxu0 %v744_v9  ;;  %v49_v21 = vpack.c.bf16 %v38_v19, %v37_v18  ;;  %v41_v24 = vld [vmem:[%s1086_s0 + $0x60] sm:$0xff]  ;;  %v42_v25 = vld [vmem:[%s1086_s0 + $0x68] sm:$0xff]  ;;  %v50_v26 = vpack.c.bf16 %v40_v23, %v39_v22  ;;  %v43_v28 = vld [vmem:[%s1086_s0 + $0x70] sm:$0xff]  ;;  %vm564_vm11 = vcmask 458112   ;;  %vm571_vm12 = vcmask 523712  }
   0xf   :  { %v51_v27 = vpack.c.bf16 %v42_v25, %v41_v24  ;;  %v44_v29 = vld [vmem:[%s1086_s0 + $0x78] sm:$0xff]  ;;  %v746_v33 = vld [vmem:[%s1089_s3 + $0x10] sm:$0xff]   ;;  %v747_v34 = vld [vmem:[%s1089_s3 + $0x8] sm:$0xff]   ;;  %vm578_vm13 = vcmask 589312   ;;  %vm585_vm14 = vcmask 654912   ;;  %vm592_vm15 = vcmask 720512  }
  0x10   :  { %v52_v30 = vpack.c.bf16 %v44_v29, %v43_v28  ;;  %v745_v31 = vld [vmem:[%s1089_s3 + $0x18] ss:$0 sps:$4 sm:$0x11]   ;;  %v748_v35 = vld [vmem:[%s1089_s3] sm:$0xff]   ;;  %vm599_vm0 = vcmask 786112   ;;  %vm606_vm1 = vcmask 851712  }
  0x11   :  { %700 = vmatmul.mubr.msk.bf16.vlgmr.msra.gmra.mxu0 %vm83_vm2, %v46_v14  ;;  %739 = vmatprep.subr.msk.bf16.mxu1 %vm296_vm3, %v745_v31  ;;  %v298_v32 = vsel %vm296_vm3, %v745_v31, 0  ;;  %v645_v37 = vld [vmem:[%s1088_s2] ss:$0 sm:$0xff]  ;;  %vm620_vm3 = vcmask 982912  }
  0x12   :  { %703 = vmatprep.mubr.msk.bf16.mxu0 %vm83_vm2, %v47_v15  ;;  %716 = vmatpush3.bf16.msra.mxu1 %v298_v32  ;;  %v968_v29 = vld [vmem:[%s1090_s4] ss:$0 sm:$0xff]  ;;  %v415_v32 = vlaneseq }
  0x13   :  { %717 = vmatprep.subr.bf16.mxu1 %v746_v33 }
  0x16   :  { %718 = vmatpush3.bf16.msra.mxu1 %v746_v33 }
  0x17   :  { %719 = vmatprep.subr.bf16.mxu1 %v747_v34 }
  0x19   :  { %704 = vmatmul.mubr.msk.bf16.gmra.mxu0 %vm83_vm2, %v48_v20 }
  0x1a   :  { %707 = vmatprep.mubr.msk.bf16.mxu0 %vm83_vm2, %v49_v21  ;;  %720 = vmatpush3.bf16.msra.mxu1 %v747_v34 }
  0x1b   :  { %721 = vmatprep.subr.bf16.mxu1 %v748_v35 }
  0x1e   :  { %722 = vmatpush3.bf16.msra.mxu1 %v748_v35 }
  0x21   :  { %708 = vmatmul.mubr.msk.bf16.gmra.mxu0 %vm83_vm2, %v50_v26 }
  0x22   :  { %711 = vmatprep.mubr.msk.bf16.mxu0 %vm83_vm2, %v51_v27 }
  0x29   :  { %712 = vmatmul.mubr.msk.bf16.gmra.mxu0 %vm83_vm2, %v52_v30  ;;  %vm613_vm2 = vcmask 917312  }
  0xd1   :  { %v701_v36 = vpop.f32.mrf.mxu0 }
  0xd2   :  { %v158_v42 = vadd.f32 %v701_v36, %v645_v37 }
  0xd3   :  { %v149_v38 = vpop.f32.mrf.mxu0 }
  0xd4   :  { %v150_v39 = vadd.f32 %v645_v37, %v149_v38 }
  0xd5   :  { %v702_v40 = vpop.f32.mrf.mxu0 }
  0xd6   :  { %v161_v41 = vadd.f32 %v702_v40, %v645_v37  ;;  %749 = vtanh.f32 %v150_v39  ;;  %v413_v39 = vld [vmem:[%s1091_s5] sm:$0x1] }
  0xd7   :  { %v152_v43 = vpop.f32.mrf.mxu0 }
  0xd8   :  { %v153_v44 = vadd.f32 %v645_v37, %v152_v43  ;;  %751 = vtanh.f32 %v161_v41  ;;  %v414_v43 = vunpack.c.l.bf16 %v413_v39 }
  0xd9   :  { %v705_v45 = vpop.f32.mrf.mxu0 }
  0xda   :  { %753 = vtanh.f32 %v153_v44  ;;  %v174_v50 = vadd.f32 %v705_v45, %v645_v37 }
  0xdb   :  { %755 = vtanh.f32 %v158_v42  ;;  %v165_v46 = vpop.f32.mrf.mxu0 }
  0xdc   :  { %v166_v47 = vadd.f32 %v645_v37, %v165_v46 }
  0xdd   :  { %v706_v48 = vpop.f32.mrf.mxu0 }
  0xde   :  { %v177_v49 = vadd.f32 %v706_v48, %v645_v37  ;;  %757 = vtanh.f32 %v166_v47 }
  0xdf   :  { %v168_v51 = vpop.f32.mrf.mxu0 }
  0xe0   :  { %v169_v52 = vadd.f32 %v645_v37, %v168_v51  ;;  %759 = vtanh.f32 %v177_v49 }
  0xe1   :  { %v709_v53 = vpop.f32.mrf.mxu0 }
  0xe2   :  { %761 = vtanh.f32 %v169_v52  ;;  %v190_v61 = vadd.f32 %v709_v53, %v645_v37 }
  0xe3   :  { %763 = vtanh.f32 %v174_v50  ;;  %v181_v54 = vpop.f32.mrf.mxu0  ;;  %v750_v56 = vpop.eup %749 }
  0xe4   :  { %v182_v55 = vadd.f32 %v645_v37, %v181_v54 }
  0xe5   :  { %v710_v57 = vpop.f32.mrf.mxu0  ;;  %v752_v58 = vpop.eup %751 }
  0xe6   :  { %v193_v59 = vadd.f32 %v710_v57, %v645_v37  ;;  %765 = vtanh.f32 %v182_v55 }
  0xe7   :  { %v754_v60 = vpop.eup %753  ;;  %v184_v62 = vpop.f32.mrf.mxu0 }
  0xe8   :  { %v756_v63 = vpop.eup %755  ;;  %v185_v0 = vadd.f32 %v645_v37, %v184_v62  ;;  %v228_v1 = vpack.c.bf16 %v754_v60, %v750_v56  ;;  %767 = vtanh.f32 %v193_v59 }
  0xe9   :  { %v713_v2 = vpop.f32.mrf.mxu0  ;;  %v229_v3 = vpack.c.bf16 %v752_v58, %v756_v63 }
  0xea   :  { %769 = vtanh.f32 %v185_v0  ;;  %723 = vmatprep.mubr.msk.bf16.mxu1 %vm271_vm4, %v228_v1  ;;  %v206_v11 = vadd.f32 %v713_v2, %v645_v37 }
  0xeb   :  { %771 = vtanh.f32 %v190_v61  ;;  %v197_v4 = vpop.f32.mrf.mxu0  ;;  %724 = vmatmul.mubr.msk.bf16.vlgmr.msra.gmra.mxu1 %vm271_vm4, %v229_v3  ;;  %v758_v6 = vpop.eup %757 }
  0xec   :  { %v198_v5 = vadd.f32 %v645_v37, %v197_v4 }
  0xed   :  { %v714_v7 = vpop.f32.mrf.mxu0  ;;  %v760_v8 = vpop.eup %759 }
  0xee   :  { %v209_v9 = vadd.f32 %v714_v7, %v645_v37  ;;  %773 = vtanh.f32 %v198_v5 }
  0xef   :  { %v762_v10 = vpop.eup %761  ;;  %v200_v12 = vpop.f32.mrf.mxu0 }
  0xf0   :  { %v764_v13 = vpop.eup %763  ;;  %v201_v14 = vadd.f32 %v645_v37, %v200_v12  ;;  %v230_v15 = vpack.c.bf16 %v762_v10, %v758_v6  ;;  %775 = vtanh.f32 %v209_v9  ;;  %v974_v37 = vshrl.u32 %v415_v32, 7 }
  0xf1   :  { %v231_v16 = vpack.c.bf16 %v760_v8, %v764_v13 }
  0xf2   :  { %777 = vtanh.f32 %v201_v14  ;;  %727 = vmatprep.mubr.msk.bf16.mxu1 %vm271_vm4, %v230_v15  ;;  %v417_v44 = vsub.s32 0, %v974_v37 }
  0xf3   :  { %779 = vtanh.f32 %v206_v11  ;;  %728 = vmatmul.mubr.msk.bf16.gmra.mxu1 %vm271_vm4, %v231_v16  ;;  %v766_v17 = vpop.eup %765 }
  0xf4   :  { %v984_v49 = vrot.slane %v414_v43, %v417_v44 }
  0xf5   :  { %v768_v18 = vpop.eup %767 }
  0xf7   :  { %v770_v19 = vpop.eup %769 }
  0xf8   :  { %v772_v20 = vpop.eup %771  ;;  %v232_v21 = vpack.c.bf16 %v770_v19, %v766_v17 }
  0xf9   :  { %v233_v22 = vpack.c.bf16 %v768_v18, %v772_v20 }
  0xfa   :  { %731 = vmatprep.mubr.msk.bf16.mxu1 %vm271_vm4, %v232_v21 }
  0xfb   :  { %732 = vmatmul.mubr.msk.bf16.gmra.mxu1 %vm271_vm4, %v233_v22  ;;  %v774_v23 = vpop.eup %773 }
  0xfd   :  { %v776_v24 = vpop.eup %775 }
  0xff   :  { %v778_v25 = vpop.eup %777 }
 0x100   :  { %v780_v26 = vpop.eup %779  ;;  %v234_v27 = vpack.c.bf16 %v778_v25, %v774_v23 }
 0x101   :  { %v235_v28 = vpack.c.bf16 %v776_v24, %v780_v26 }
 0x102   :  { %735 = vmatprep.mubr.msk.bf16.mxu1 %vm271_vm4, %v234_v27 }
 0x103   :  { %736 = vmatmul.mubr.msk.bf16.gmra.mxu1 %vm271_vm4, %v235_v28  ;;  %vm627_vm4 = vcmask 1048512  }
 0x1ab   :  { %v725_v30 = vpop.f32.mrf.mxu1 }
 0x1ac   :  { %v343_v31 = vadd.f32 %v725_v30, %v968_v29 }
 0x1ad   :  { %v334_v33 = vpop.f32.mrf.mxu1 }
 0x1ae   :  { %781 = vtanh.f32 %v343_v31  ;;  %v335_v34 = vadd.f32 %v968_v29, %v334_v33 }
 0x1af   :  { %v726_v35 = vpop.f32.mrf.mxu1 }
 0x1b0   :  { %783 = vtanh.f32 %v335_v34  ;;  %v346_v36 = vadd.f32 %v726_v35, %v968_v29 }
 0x1b1   :  { %v337_v38 = vpop.f32.mrf.mxu1 }
 0x1b2   :  { %785 = vtanh.f32 %v346_v36  ;;  %v338_v40 = vadd.f32 %v968_v29, %v337_v38 }
 0x1b3   :  { %v729_v41 = vpop.f32.mrf.mxu1 }
 0x1b4   :  { %787 = vtanh.f32 %v338_v40  ;;  %v359_v42 = vadd.f32 %v729_v41, %v968_v29 }
 0x1b5   :  { %v350_v45 = vpop.f32.mrf.mxu1 }
 0x1b6   :  { %789 = vtanh.f32 %v359_v42  ;;  %v351_v46 = vadd.f32 %v968_v29, %v350_v45 }
 0x1b7   :  { %v730_v47 = vpop.f32.mrf.mxu1 }
 0x1b8   :  { %791 = vtanh.f32 %v351_v46  ;;  %v362_v48 = vadd.f32 %v730_v47, %v968_v29 }
 0x1b9   :  { %v353_v50 = vpop.f32.mrf.mxu1 }
 0x1ba   :  { %793 = vtanh.f32 %v362_v48  ;;  %v354_v51 = vadd.f32 %v968_v29, %v353_v50 }
 0x1bb   :  { %v782_v52 = vpop.eup %781  ;;  %v733_v53 = vpop.f32.mrf.mxu1 }
 0x1bc   :  { %795 = vtanh.f32 %v354_v51  ;;  %v375_v54 = vadd.f32 %v733_v53, %v968_v29  ;;  %v421_v55 = vmul.f32 %v782_v52, %v984_v49 }
 0x1bd   :  { %v784_v56 = vpop.eup %783  ;;  %v366_v57 = vpop.f32.mrf.mxu1 }
 0x1be   :  { %797 = vtanh.f32 %v375_v54  ;;  %v367_v58 = vadd.f32 %v968_v29, %v366_v57  ;;  %v442_v59 = vsel %vm435_vm5, %v421_v55, 0.0  ;;  %v419_v60 = vmul.f32 %v784_v56, %v984_v49 }
 0x1bf   :  { %v786_v61 = vpop.eup %785  ;;  %443 = vadd.xlane.f32.xlu1 %v442_v59  ;;  %v734_v62 = vpop.f32.mrf.mxu1  ;;  %v1028_v55 = vand.u32 127, %v415_v32 }
 0x1c0   :  { %799 = vtanh.f32 %v367_v58  ;;  %v378_v63 = vadd.f32 %v734_v62, %v968_v29  ;;  %v436_v0 = vsel %vm435_vm5, %v419_v60, 0.0  ;;  %v422_v1 = vmul.f32 %v786_v61, %v984_v49 }
 0x1c1   :  { %v788_v2 = vpop.eup %787  ;;  %v369_v3 = vpop.f32.mrf.mxu1  ;;  %437 = vadd.xlane.f32.xlu0 %v436_v0  ;;  %v524_v56 = vadd.s32 4294967288, %v1028_v55  ;;  %v531_v59 = vadd.s32 4294967280, %v1028_v55  ;;  %v1035_v60 = vstv %s1092_s6  ;;  %v522_v61 = vsub.s32 %v1028_v55, %v974_v37  ;;  %s836_s6 = smov [#allocation3]  }
 0x1c2   :  { %801 = vtanh.f32 %v378_v63  ;;  %v370_v4 = vadd.f32 %v968_v29, %v369_v3  ;;  %v445_v5 = vsel %vm435_vm5, %v422_v1, 0.0  ;;  %v420_v6 = vmul.f32 %v788_v2, %v984_v49  ;;  %s637_s25 = sshll.u32 %s836_s6, 4  ;;  %s638_s25 = int_to_ptr.vmem [resolvable:$true] %s637_s25 }
 0x1c3   :  { %v790_v7 = vpop.eup %789  ;;  %446 = vadd.xlane.f32.xlu1 %v445_v5  ;;  %v737_v8 = vpop.f32.mrf.mxu1  ;;  %v538_v63 = vadd.s32 4294967272, %v1028_v55  ;;  %v534_v1 = vsub.s32 %v531_v59, %v974_v37  ;;  %v545_v5 = vadd.s32 4294967264, %v1028_v55  ;;  %s813_s26 = scalar_lea.vmem %s638_s25, 16  ;;  %s817_s27 = scalar_lea.vmem %s638_s25, 32 }
 0x1c4   :  { %803 = vtanh.f32 %v370_v4  ;;  %v391_v9 = vadd.f32 %v737_v8, %v968_v29  ;;  %v439_v10 = vsel %vm435_vm5, %v420_v6, 0.0  ;;  %v425_v11 = vmul.f32 %v790_v7, %v984_v49  ;;  %p814_p0 = scmp.ne.s32.totalorder %s638_s25, %s813_s26  ;;  %p818_p1 = scmp.lt.s32.totalorder %s638_s25, %s638_s25 }
 0x1c5   :  { %v792_v12 = vpop.eup %791  ;;  %v382_v13 = vpop.f32.mrf.mxu1  ;;  %440 = vadd.xlane.f32.xlu0 %v439_v10  ;;  %v541_v8 = vsub.s32 %v538_v63, %v974_v37  ;;  %p819_p2 = scmp.lt.s32.totalorder %s817_s27, %s813_s26 }
 0x1c6   :  { %v383_v14 = vadd.f32 %v968_v29, %v382_v13  ;;  %805 = vtanh.f32 %v391_v9  ;;  %v454_v17 = vsel %vm435_vm5, %v425_v11, 0.0  ;;  %v423_v20 = vmul.f32 %v792_v12, %v984_v49 }
 0x1c7   :  { %v794_v15 = vpop.eup %793  ;;  %v738_v16 = vpop.f32.mrf.mxu1  ;;  %v552_v9 = vadd.s32 4294967256, %v1028_v55  ;;  %v559_v12 = vadd.s32 4294967248, %v1028_v55  ;;  %p820_p3 = por %p819_p2, %p818_p1 }
 0x1c8   :  { %807 = vtanh.f32 %v383_v14  ;;  %v394_v18 = vadd.f32 %v738_v16, %v968_v29  ;;  %v426_v19 = vmul.f32 %v794_v15, %v984_v49  ;;  %v448_v27 = vsel %vm435_vm5, %v423_v20, 0.0 }
 0x1c9   :  { %v796_v21 = vpop.eup %795  ;;  %v385_v22 = vpop.f32.mrf.mxu1  ;;  %455 = vadd.xlane.f32.xlu0 %v454_v17  ;;  %v548_v15 = vsub.s32 %v545_v5, %v974_v37  ;;  %v622_v5 = vadd.s32 4294967176, %v1028_v55  ;;  %p821_p4 = pnand %p820_p3, %p814_p0 }
 0x1ca   :  { %v386_v23 = vadd.f32 %v968_v29, %v385_v22  ;;  %v457_v24 = vsel %vm435_vm5, %v426_v19, 0.0  ;;  %v424_v25 = vmul.f32 %v796_v21, %v984_v49  ;;  %809 = vtanh.f32 %v394_v18 }
 0x1cb   :  { %v798_v26 = vpop.eup %797  ;;  %458 = vadd.xlane.f32.xlu1 %v457_v24  ;;  %v555_v19 = vsub.s32 %v552_v9, %v974_v37  ;;  %v562_v21 = vsub.s32 %v559_v12, %v974_v37  ;;  %v566_v22 = vadd.s32 4294967240, %v1028_v55 }
 0x1cc   :  { %811 = vtanh.f32 %v386_v23  ;;  %v429_v28 = vmul.f32 %v798_v26, %v984_v49  ;;  %v451_v31 = vsel %vm435_vm5, %v424_v25, 0.0 }
 0x1cd   :  { %v800_v30 = vpop.eup %799  ;;  %449 = vadd.xlane.f32.xlu0 %v448_v27  ;;  %v573_v27 = vadd.s32 4294967232, %v1028_v55 }
 0x1ce   :  { %v466_v29 = vsel %vm435_vm5, %v429_v28, 0.0  ;;  %v427_v35 = vmul.f32 %v800_v30, %v984_v49  ;;  %v587_v30 = vadd.s32 4294967216, %v1028_v55 }
 0x1cf   :  { %v802_v33 = vpop.eup %801  ;;  %452 = vadd.xlane.f32.xlu1 %v451_v31 }
 0x1d0   :  { %v430_v34 = vmul.f32 %v802_v33, %v984_v49  ;;  %v460_v41 = vsel %vm435_vm5, %v427_v35, 0.0  ;;  %v569_v35 = vsub.s32 %v566_v22, %v974_v37 }
 0x1d1   :  { %v804_v36 = vpop.eup %803  ;;  %467 = vadd.xlane.f32.xlu0 %v466_v29 }
 0x1d2   :  { %v469_v38 = vsel %vm435_vm5, %v430_v34, 0.0  ;;  %v428_v39 = vmul.f32 %v804_v36, %v984_v49  ;;  %v580_v34 = vadd.s32 4294967224, %v1028_v55 }
 0x1d3   :  { %470 = vadd.xlane.f32.xlu1 %v469_v38  ;;  %v806_v40 = vpop.eup %805  ;;  %v594_v38 = vadd.s32 4294967208, %v1028_v55 }
 0x1d4   :  { %v463_v43 = vsel %vm435_vm5, %v428_v39, 0.0  ;;  %v433_v47 = vmul.f32 %v806_v40, %v984_v49 }
 0x1d5   :  { %v808_v42 = vpop.eup %807  ;;  %461 = vadd.xlane.f32.xlu0 %v460_v41 }
 0x1d6   :  { %v431_v44 = vmul.f32 %v808_v42, %v984_v49  ;;  %v478_v52 = vsel %vm435_vm5, %v433_v47, 0.0  ;;  %v576_v42 = vsub.s32 %v573_v27, %v974_v37 }
 0x1d7   :  { %464 = vadd.xlane.f32.xlu1 %v463_v43  ;;  %v810_v45 = vpop.eup %809  ;;  %v590_v43 = vsub.s32 %v587_v30, %v974_v37 }
 0x1d8   :  { %v472_v46 = vsel %vm435_vm5, %v431_v44, 0.0  ;;  %v434_v53 = vmul.f32 %v810_v45, %v984_v49  ;;  %v601_v45 = vadd.s32 4294967200, %v1028_v55 }
 0x1d9   :  { %v812_v48 = vpop.eup %811  ;;  %473 = vadd.xlane.f32.xlu0 %v472_v46 }
 0x1da   :  { %v432_v50 = vmul.f32 %v812_v48, %v984_v49  ;;  %v481_v54 = vsel %vm435_vm5, %v434_v53, 0.0  ;;  %v527_v49 = vsub.s32 %v524_v56, %v974_v37  ;;  %v583_v48 = vsub.s32 %v580_v34, %v974_v37 }
 0x1dc   :  { %v475_v51 = vsel %vm435_vm5, %v432_v50, 0.0 }
 0x1dd   :  { %476 = vadd.xlane.f32.xlu1 %v475_v51  ;;  %479 = vadd.xlane.f32.xlu0 %v478_v52  ;;  %v597_v52 = vsub.s32 %v594_v38, %v974_v37 }
 0x1e1   :  { %482 = vadd.xlane.f32.xlu1 %v481_v54 }
 0x248   :  { %v444_v57 = vpop.xlane.xlu1 %443 }
 0x249   :  { %v488_v3 = vadd.f32 %v1035_v60, %v444_v57 }
 0x24a   :  { %v438_v58 = vpop.xlane.xlu0 %437 }
 0x24b   :  { %v486_v62 = vadd.f32 %v1035_v60, %v438_v58  ;;  %v535_v14 = vrot.slane %v488_v3, %v534_v1  ;;  %v608_v58 = vadd.s32 4294967192, %v1028_v55 }
 0x24c   :  { %v447_v2 = vpop.xlane.xlu1 %446 }
 0x24d   :  { %v523_v6 = vrot.slane %v486_v62, %v522_v61  ;;  %v489_v10 = vadd.f32 %v1035_v60, %v447_v2  ;;  %v615_v62 = vadd.s32 4294967184, %v1028_v55 }
 0x24e   :  { %v441_v32 = vpop.xlane.xlu0 %440 }
 0x24f   :  { %v487_v0 = vadd.f32 %v1035_v60, %v441_v32  ;;  %v542_v20 = vrot.slane %v489_v10, %v541_v8  ;;  %v618_v9 = vsub.s32 %v615_v62, %v974_v37 }
 0x251   :  { %v528_v4 = vrot.slane %v487_v0, %v527_v49  ;;  %v604_v49 = vsub.s32 %v601_v45, %v974_v37 }
 0x252   :  { %v456_v7 = vpop.xlane.xlu0 %455 }
 0x253   :  { %v530_v11 = vsel %vm529_vm6, %v528_v4, %v523_v6  ;;  %v492_v24 = vadd.f32 %v1035_v60, %v456_v7  ;;  %v611_v4 = vsub.s32 %v608_v58, %v974_v37 }
 0x254   :  { %v459_v13 = vpop.xlane.xlu1 %458  ;;  %v537_v17 = vsel %vm536_vm7, %v535_v14, %v530_v11 }
 0x255   :  { %v544_v28 = vsel %vm543_vm8, %v542_v20, %v537_v17  ;;  %v493_v36 = vadd.f32 %v1035_v60, %v459_v13  ;;  %v563_v40 = vrot.slane %v492_v24, %v562_v21 }
 0x256   :  { %v450_v16 = vpop.xlane.xlu0 %449 }
 0x257   :  { %v490_v18 = vadd.f32 %v1035_v60, %v450_v16  ;;  %v570_v50 = vrot.slane %v493_v36, %v569_v35 }
 0x258   :  { %v453_v23 = vpop.xlane.xlu1 %452 }
 0x259   :  { %v549_v25 = vrot.slane %v490_v18, %v548_v15  ;;  %v491_v26 = vadd.f32 %v1035_v60, %v453_v23  ;;  %v625_v15 = vsub.s32 %v622_v5, %v974_v37 }
 0x25a   :  { %v468_v31 = vpop.xlane.xlu0 %467 }
 0x25b   :  { %v551_v33 = vsel %vm550_vm9, %v549_v25, %v544_v28  ;;  %v556_v29 = vrot.slane %v491_v26, %v555_v19  ;;  %v496_v51 = vadd.f32 %v1035_v60, %v468_v31 }
 0x25c   :  { %v471_v39 = vpop.xlane.xlu1 %470 }
 0x25d   :  { %v558_v41 = vsel %vm557_vm10, %v556_v29, %v551_v33  ;;  %v497_v54 = vadd.f32 %v1035_v60, %v471_v39  ;;  %v591_v1 = vrot.slane %v496_v51, %v590_v43 }
 0x25e   :  { %v462_v44 = vpop.xlane.xlu0 %461  ;;  %v565_v46 = vsel %vm564_vm11, %v563_v40, %v558_v41 }
 0x25f   :  { %v494_v47 = vadd.f32 %v1035_v60, %v462_v44  ;;  %v572_v59 = vsel %vm571_vm12, %v570_v50, %v565_v46  ;;  %v598_v2 = vrot.slane %v497_v54, %v597_v52 }
 0x260   :  { %v465_v53 = vpop.xlane.xlu1 %464 }
 0x261   :  { %v577_v56 = vrot.slane %v494_v47, %v576_v42  ;;  %v495_v57 = vadd.f32 %v1035_v60, %v465_v53 }
 0x262   :  { %v474_v61 = vpop.xlane.xlu0 %473 }
 0x263   :  { %v579_v32 = vsel %vm578_vm13, %v577_v56, %v572_v59  ;;  %v584_v63 = vrot.slane %v495_v57, %v583_v48  ;;  %v498_v0 = vadd.f32 %v1035_v60, %v474_v61 }
 0x265   :  { %v586_v3 = vsel %vm585_vm14, %v584_v63, %v579_v32  ;;  %v605_v7 = vrot.slane %v498_v0, %v604_v49 }
 0x266   :  { %v593_v6 = vsel %vm592_vm15, %v591_v1, %v586_v3  ;;  %v477_v8 = vpop.xlane.xlu1 %476  ;;  %v480_v10 = vpop.xlane.xlu0 %479 }
 0x267   :  { %v600_v11 = vsel %vm599_vm0, %v598_v2, %v593_v6  ;;  %v499_v12 = vadd.f32 %v1035_v60, %v477_v8  ;;  %v500_v13 = vadd.f32 %v1035_v60, %v480_v10 }
 0x268   :  { %v607_v16 = vsel %vm606_vm1, %v605_v7, %v600_v11 }
 0x269   :  { %v612_v14 = vrot.slane %v499_v12, %v611_v4  ;;  %v619_v17 = vrot.slane %v500_v13, %v618_v9 }
 0x26a   :  { %v483_v18 = vpop.xlane.xlu1 %482 }
 0x26b   :  { %v501_v55 = vadd.f32 %v1035_v60, %v483_v18  ;;  %v614_v19 = vsel %vm613_vm2, %v612_v14, %v607_v16 }
 0x26c   :  { %v621_v21 = vsel %vm620_vm3, %v619_v17, %v614_v19 }
 0x26d   :  { %v626_v20 = vrot.slane %v501_v55, %v625_v15 }
 0x26f   :  { %v628_v22 = vsel %vm627_vm4, %v626_v20, %v621_v21 }
 0x270   :  { %630 = vst [vmem:[#allocation3] sm:$0x1] %v628_v22 }
 0x271   :  { %824 = shalt.err (!%p821_p4)
}
 0x272   :  { %640 = dma.vmem_to_hbm [thread:$0]  %s638_s25, 16, %s1093_s7, [#allocation4]  }
 0x273   :  { %833 = dma.done.wait [#allocation4], 16  }
 0x274   :  { %834 = vsyncadd [#allocation4], 4294967280 }
 0x275   :  { %644 = vsyncpa [#allocation4], 1 }

</bundles_post_ra>
